<compile_context>
chip_gen: v5e
topology: v5e:2x2
jax: 0.10.0
libtpu: 0.0.40
codegen_flags: <defaults>
</compile_context>

<pallas_src>
import functools

import jax
import jax.numpy as jnp
from jax import lax
from jax.experimental import pallas as pl
from jax.experimental.pallas import tpu as pltpu

EPS = 1e-6
_TAPS = tuple((kh, kw) for kh in range(3) for kw in range(3))  # static 3x3 taps


def prepare_downsample_params(conv_w, gamma, beta, compute_dtype=None):
    """Hoisted preprocessing — call once per model load (weights are static).

    conv_w: (2C, C, 3, 3) PyTorch OIHW layout.
    Returns:
      w9:     (9*C, C2P) fused-tap matmul weight (C2P = 2C rounded up to 128);
              row (k*C + c) holds tap k = kh*3 + kw, input channel c.
      g2, b2: (1, C2P)   LayerNorm affine params (f32, zero padded).

    Pass compute_dtype=jnp.bfloat16 for inference: ~4x MXU throughput on
    v5e/v6e/v7x and half the input/weight DMA bytes (f32 accumulation kept).
    """
    C2, C = conv_w.shape[0], conv_w.shape[1]
    C2P = ((C2 + 127) // 128) * 128
    if compute_dtype is None:
        compute_dtype = conv_w.dtype
    wt = jnp.transpose(conv_w, (2, 3, 1, 0))                       # (3,3,C,2C)
    w_taps = jnp.stack([wt[kh, kw] for kh, kw in _TAPS], axis=0)    # (9,C,2C)
    # NOTE: padded output channels stay exact ONLY because the padded weight
    # columns, gamma and beta are all zero (the conv has no bias).  If a bias
    # is ever added, the LayerNorm statistics over C2P would become wrong.
    w_taps = jnp.pad(w_taps, ((0, 0), (0, 0), (0, C2P - C2)))
    w9 = w_taps.reshape(9 * C, C2P).astype(compute_dtype)
    g2 = jnp.pad(gamma.astype(jnp.float32), (0, C2P - C2)).reshape(1, C2P)
    b2 = jnp.pad(beta.astype(jnp.float32), (0, C2P - C2)).reshape(1, C2P)
    return w9, g2, b2


def _pick_row_tile(HO, WO, C, C2P, in_b, out_b, budget_bytes=8 * 1024 * 1024):
    """Largest divisor TH of HO whose per-step working set fits `budget_bytes`."""
    WH = WO + 1
    best = 1
    for th in range(1, HO + 1):
        if HO % th:
            continue
        if (th * WO) % 8 and th != HO:
            continue  # keep output blocks sublane-aligned
        work = (2 * 4 * th * WH * C * in_b       # main plane tile (double buffered)
                + 2 * 4 * WH * C * in_b          # halo row        (double buffered)
                + th * WO * 9 * C * in_b         # staged LHS scratch
                + 2 * th * WO * C2P * out_b      # output tile     (double buffered)
                + 3 * th * WO * C2P * 4)         # f32 matmul / LayerNorm temporaries
        if work <= budget_bytes:
            best = th
    return best


@functools.partial(jax.jit, static_argnames=("row_tile", "strip_padding"))
def downsample_forward(x, w9, g2, b2, *, row_tile=None, strip_padding=True):
    """x: (N, H, W, C) channels_last.  Returns (N, Ho, Wo, 2C)."""
    N, H, W, C = x.shape
    C2 = 2 * C
    C2P = g2.shape[-1]
    HO, WO = (H + 1) // 2, (W + 1) // 2          # conv output size (k=3,s=2,p=1)
    HH, WH = HO + 1, WO + 1                      # per-parity plane size (with halo)
    cdt = w9.dtype
    in_b = jnp.dtype(cdt).itemsize
    out_b = jnp.dtype(x.dtype).itemsize

    TH = row_tile if row_tile is not None else _pick_row_tile(
        HO, WO, C, C2P, in_b, out_b)
    assert HO % TH == 0, (HO, TH)
    NT = HO // TH

    # Parity decomposition (single pad + transpose, done by XLA):
    #   planes[n*4 + ph*2 + pw, i, j, c] = xpad[n, 2i+ph, 2j+pw, c]
    # Extra bottom/right zeros only square up the reshape and are never read.
    # TODO(synk): could be folded into the kernel with strided DMAs from a
    # pl.ANY input to save one HBM round-trip of the (padded) input.
    xp = jnp.pad(x.astype(cdt),
                 ((0, 0), (1, 2 * HO + 1 - H), (1, 2 * WO + 1 - W), (0, 0)))
    planes = xp.reshape(N, HH, 2, WH, 2, C).transpose(0, 2, 4, 1, 3, 5)
    planes = planes.reshape(N * 4, HH, WH, C)

    inv_c2 = 1.0 / C2

    def kernel(main_ref, halo_ref, w_ref, g_ref, b_ref, o_ref, lhs_ref):
        # Stage the 9 tap windows into the (TH, WO, 9C) VMEM LHS buffer.
        # Every element of lhs_ref is (re)written each step, so no init needed.
        for k, (kh, kw) in enumerate(_TAPS):             # fully unrolled, static
            ph, pw, oh, ow = kh % 2, kw % 2, kh // 2, kw // 2
            p = ph * 2 + pw
            col = slice(k * C, (k + 1) * C)
            if oh == 0:
                lhs_ref[:, :, col] = main_ref[p, 0:TH, ow:ow + WO, :]
            else:
                # Needs plane rows [1, TH]; local row TH is the halo row.
                if TH > 1:
                    lhs_ref[0:TH - 1, :, col] = main_ref[p, 1:TH, ow:ow + WO, :]
                lhs_ref[TH - 1:TH, :, col] = halo_ref[p, 0:1, ow:ow + WO, :]
        # One MXU matmul with contraction depth 9C, f32 accumulation.
        lhs = lhs_ref[...].reshape(TH * WO, 9 * C)
        acc = jnp.dot(lhs, w_ref[...], preferred_element_type=jnp.float32)
        # Fused single-pass LayerNorm over the true C2 channels (padded
        # channels carry zero weights -> contribute exactly 0 to both sums).
        s = jnp.sum(acc, axis=-1, keepdims=True)
        ss = jnp.sum(acc * acc, axis=-1, keepdims=True)
        mean = s * inv_c2
        var = jnp.maximum(ss * inv_c2 - mean * mean, 0.0)
        y = (acc - mean) * lax.rsqrt(var + EPS)
        o_ref[...] = (y * g_ref[...] + b_ref[...]).astype(o_ref.dtype)

    # Realistic VMEM budget from the per-step footprint (never claim all of
    # v7x's 64 MiB); generous 2x + margin so the compiler has headroom.
    step_bytes = (2 * 4 * TH * WH * C * in_b + 2 * 4 * WH * C * in_b
                  + TH * WO * 9 * C * in_b + 2 * TH * WO * C2P * out_b
                  + 3 * TH * WO * C2P * 4
                  + 2 * (9 * C * C2P + 2 * C2P) * max(in_b, 4))
    vmem_limit = int(max(16 * 1024 * 1024,
                         min(48 * 1024 * 1024, 2 * step_bytes + (4 << 20))))

    flops = 2 * N * HO * WO * 9 * C * C2P
    bytes_accessed = (planes.size * in_b + 9 * C * C2P * in_b
                      + N * HO * WO * C2P * out_b)

    out = pl.pallas_call(
        kernel,
        out_shape=jax.ShapeDtypeStruct((N, HO * WO, C2P), x.dtype),
        grid_spec=pltpu.PrefetchScalarGridSpec(
            num_scalar_prefetch=0,
            grid=(N, NT),
            in_specs=[
                # TH plane rows of image n (all 4 parities, width halo included)
                pl.BlockSpec((4, TH, WH, C), lambda n, t: (n, t, 0, 0)),
                # one-row bottom halo: size-1 dim => block index == element row
                pl.BlockSpec((4, 1, WH, C), lambda n, t: (n, (t + 1) * TH, 0, 0)),
                # fused-tap weight, resident (constant index -> fetched once)
                pl.BlockSpec((9 * C, C2P), lambda n, t: (0, 0)),
                pl.BlockSpec((1, C2P), lambda n, t: (0, 0)),
                pl.BlockSpec((1, C2P), lambda n, t: (0, 0)),
            ],
            out_specs=pl.BlockSpec((None, TH * WO, C2P), lambda n, t: (n, t, 0)),
            scratch_shapes=[pltpu.VMEM((TH, WO, 9 * C), cdt)],
        ),
        compiler_params=pltpu.CompilerParams(
            dimension_semantics=("parallel", "parallel"),
            vmem_limit_bytes=vmem_limit),
        cost_estimate=pl.CostEstimate(
            flops=flops, transcendentals=N * HO * WO,
            bytes_accessed=int(bytes_accessed)),
    )(planes, planes, w9, g2, b2)

    out = out.reshape(N, HO, WO, C2P)
    if strip_padding and C2P != C2:
        # Perf note (v6e/v5e): avoid this extra HBM round-trip by letting the
        # consumer accept the padded C2P channels, or pick C so 2C % 128 == 0.
        out = out[..., :C2]
    return out


def downsample_layer(x, conv_w, gamma, beta, compute_dtype=None, row_tile=None):
    """Convenience wrapper matching the original module's forward()."""
    w9, g2, b2 = prepare_downsample_params(conv_w, gamma, beta, compute_dtype)
    return downsample_forward(x, w9, g2, b2, row_tile=row_tile)


def _reference(x, conv_w, gamma, beta):
    """Pure-JAX reference of the PyTorch forward (f32)."""
    y = lax.conv_general_dilated(
        x.astype(jnp.float32), conv_w.astype(jnp.float32),
        window_strides=(2, 2), padding=((1, 1), (1, 1)),
        dimension_numbers=("NHWC", "OIHW", "NHWC"))
    mean = jnp.mean(y, axis=-1, keepdims=True)
    var = jnp.mean(jnp.square(y - mean), axis=-1, keepdims=True)
    return (y - mean) * lax.rsqrt(var + EPS) * gamma + beta


if __name__ == "__main__":
    key = jax.random.PRNGKey(0)
    k1, k2, k3, k4 = jax.random.split(key, 4)

    N, H, W, C = 2, 16, 16, 4           # small shapes consistent with the module
    x = jax.random.normal(k1, (N, H, W, C), dtype=jnp.float32)
    conv_w = jax.random.normal(k2, (2 * C, C, 3, 3), dtype=jnp.float32) * 0.1
    # Deterministic LayerNorm affine params (synthetic init, not a checkpoint).
    gamma = 1.0 + 0.01 * jax.random.normal(k3, (2 * C,), dtype=jnp.float32)
    beta = 0.01 * jax.random.normal(k4, (2 * C,), dtype=jnp.float32)

    w9, g2, b2 = prepare_downsample_params(conv_w, gamma, beta)
    ref = _reference(x, conv_w, gamma, beta)

    # Exercise both the spatially tiled path (grid=(N, HO//TH)) and the
    # auto-picked tile (whole image at these tiny shapes).
    for row_tile in (4, None):
        out = downsample_forward(x, w9, g2, b2, row_tile=row_tile)
        out = jax.block_until_ready(out)
        assert out.shape == (N, H // 2, W // 2, 2 * C), out.shape
        err = float(jnp.max(jnp.abs(out - ref)))
        assert jnp.allclose(out, ref, atol=1e-4, rtol=1e-4), (row_tile, err)

    print("KERNEL_OK")
</pallas_src>

<mosaic_0001>
module attributes {stable_mosaic.version = 11 : i64} {
  func.func @kernel(%arg0: i32, %arg1: i32, %arg2: memref<4x4x9x4xf32, #tpu.memory_space<vmem>>, %arg3: memref<4x1x9x4xf32, #tpu.memory_space<vmem>>, %arg4: memref<36x128xf32, #tpu.memory_space<vmem>>, %arg5: memref<1x128xf32, #tpu.memory_space<vmem>>, %arg6: memref<1x128xf32, #tpu.memory_space<vmem>>, %arg7: memref<1x32x128xf32, #tpu.memory_space<vmem>>, %arg8: memref<4x8x36xf32, #tpu.memory_space<vmem>>) attributes {dimension_semantics = [#tpu.dimension_semantics<parallel>, #tpu.dimension_semantics<parallel>], iteration_bounds = array<i64: 2, 2>, scalar_prefetch = 0 : i64, scratch_operands = 1 : i64, tpu.core_type = #tpu.core_type<tc>, window_params = [{transform_indices = @transform_0, window_bounds = array<i64: 4, 4, 9, 4>}, {transform_indices = @transform_1, window_bounds = array<i64: 4, 1, 9, 4>}, {pipeline_mode = #tpu.pipeline_mode<synchronous>, transform_indices = @transform_2, window_bounds = array<i64: 36, 128>}, {pipeline_mode = #tpu.pipeline_mode<synchronous>, transform_indices = @transform_3, window_bounds = array<i64: 1, 128>}, {pipeline_mode = #tpu.pipeline_mode<synchronous>, transform_indices = @transform_4, window_bounds = array<i64: 1, 128>}, {transform_indices = @transform_5, window_bounds = array<i64: 1, 32, 128>}]} {
    %c0 = arith.constant 0 : index
    %c0_0 = arith.constant 0 : index
    %c0_1 = arith.constant 0 : index
    %c0_2 = arith.constant 0 : index
    %0 = vector.load %arg2[%c0, %c0_0, %c0_1, %c0_2] : memref<4x4x9x4xf32, #tpu.memory_space<vmem>>, vector<1x4x8x4xf32>
    %1 = vector.shape_cast %0 : vector<1x4x8x4xf32> to vector<4x8x4xf32>
    %c0_3 = arith.constant 0 : index
    %c0_4 = arith.constant 0 : index
    %c0_5 = arith.constant 0 : index
    %2 = vector.load %arg8[%c0_3, %c0_4, %c0_5] : memref<4x8x36xf32, #tpu.memory_space<vmem>>, vector<4x8x4xf32>
    tpu.vector_store %arg8[%c0_3, %c0_4, %c0_5], %1 {strides = array<i32>} : memref<4x8x36xf32, #tpu.memory_space<vmem>>, vector<4x8x4xf32>,
    %c1 = arith.constant 1 : index
    %c0_6 = arith.constant 0 : index
    %c0_7 = arith.constant 0 : index
    %c0_8 = arith.constant 0 : index
    %3 = vector.load %arg2[%c1, %c0_6, %c0_7, %c0_8] : memref<4x4x9x4xf32, #tpu.memory_space<vmem>>, vector<1x4x8x4xf32>
    %4 = vector.shape_cast %3 : vector<1x4x8x4xf32> to vector<4x8x4xf32>
    %c0_9 = arith.constant 0 : index
    %c0_10 = arith.constant 0 : index
    %c4 = arith.constant 4 : index
    %5 = vector.load %arg8[%c0_9, %c0_10, %c4] : memref<4x8x36xf32, #tpu.memory_space<vmem>>, vector<4x8x4xf32>
    tpu.vector_store %arg8[%c0_9, %c0_10, %c4], %4 {strides = array<i32>} : memref<4x8x36xf32, #tpu.memory_space<vmem>>, vector<4x8x4xf32>,
    %c0_11 = arith.constant 0 : index
    %c0_12 = arith.constant 0 : index
    %c1_13 = arith.constant 1 : index
    %c0_14 = arith.constant 0 : index
    %6 = vector.load %arg2[%c0_11, %c0_12, %c1_13, %c0_14] : memref<4x4x9x4xf32, #tpu.memory_space<vmem>>, vector<1x4x8x4xf32>
    %7 = vector.shape_cast %6 : vector<1x4x8x4xf32> to vector<4x8x4xf32>
    %c0_15 = arith.constant 0 : index
    %c0_16 = arith.constant 0 : index
    %c8 = arith.constant 8 : index
    %8 = vector.load %arg8[%c0_15, %c0_16, %c8] : memref<4x8x36xf32, #tpu.memory_space<vmem>>, vector<4x8x4xf32>
    tpu.vector_store %arg8[%c0_15, %c0_16, %c8], %7 {strides = array<i32>} : memref<4x8x36xf32, #tpu.memory_space<vmem>>, vector<4x8x4xf32>,
    %c2 = arith.constant 2 : index
    %c0_17 = arith.constant 0 : index
    %c0_18 = arith.constant 0 : index
    %c0_19 = arith.constant 0 : index
    %9 = vector.load %arg2[%c2, %c0_17, %c0_18, %c0_19] : memref<4x4x9x4xf32, #tpu.memory_space<vmem>>, vector<1x4x8x4xf32>
    %10 = vector.shape_cast %9 : vector<1x4x8x4xf32> to vector<4x8x4xf32>
    %c0_20 = arith.constant 0 : index
    %c0_21 = arith.constant 0 : index
    %c12 = arith.constant 12 : index
    %11 = vector.load %arg8[%c0_20, %c0_21, %c12] : memref<4x8x36xf32, #tpu.memory_space<vmem>>, vector<4x8x4xf32>
    tpu.vector_store %arg8[%c0_20, %c0_21, %c12], %10 {strides = array<i32>} : memref<4x8x36xf32, #tpu.memory_space<vmem>>, vector<4x8x4xf32>,
    %c3 = arith.constant 3 : index
    %c0_22 = arith.constant 0 : index
    %c0_23 = arith.constant 0 : index
    %c0_24 = arith.constant 0 : index
    %12 = vector.load %arg2[%c3, %c0_22, %c0_23, %c0_24] : memref<4x4x9x4xf32, #tpu.memory_space<vmem>>, vector<1x4x8x4xf32>
    %13 = vector.shape_cast %12 : vector<1x4x8x4xf32> to vector<4x8x4xf32>
    %c0_25 = arith.constant 0 : index
    %c0_26 = arith.constant 0 : index
    %c16 = arith.constant 16 : index
    %14 = vector.load %arg8[%c0_25, %c0_26, %c16] : memref<4x8x36xf32, #tpu.memory_space<vmem>>, vector<4x8x4xf32>
    tpu.vector_store %arg8[%c0_25, %c0_26, %c16], %13 {strides = array<i32>} : memref<4x8x36xf32, #tpu.memory_space<vmem>>, vector<4x8x4xf32>,
    %c2_27 = arith.constant 2 : index
    %c0_28 = arith.constant 0 : index
    %c1_29 = arith.constant 1 : index
    %c0_30 = arith.constant 0 : index
    %15 = vector.load %arg2[%c2_27, %c0_28, %c1_29, %c0_30] : memref<4x4x9x4xf32, #tpu.memory_space<vmem>>, vector<1x4x8x4xf32>
    %16 = vector.shape_cast %15 : vector<1x4x8x4xf32> to vector<4x8x4xf32>
    %c0_31 = arith.constant 0 : index
    %c0_32 = arith.constant 0 : index
    %c20 = arith.constant 20 : index
    %17 = vector.load %arg8[%c0_31, %c0_32, %c20] : memref<4x8x36xf32, #tpu.memory_space<vmem>>, vector<4x8x4xf32>
    tpu.vector_store %arg8[%c0_31, %c0_32, %c20], %16 {strides = array<i32>} : memref<4x8x36xf32, #tpu.memory_space<vmem>>, vector<4x8x4xf32>,
    %c0_33 = arith.constant 0 : index
    %c1_34 = arith.constant 1 : index
    %c0_35 = arith.constant 0 : index
    %c0_36 = arith.constant 0 : index
    %18 = vector.load %arg2[%c0_33, %c1_34, %c0_35, %c0_36] : memref<4x4x9x4xf32, #tpu.memory_space<vmem>>, vector<1x3x8x4xf32>
    %19 = vector.shape_cast %18 : vector<1x3x8x4xf32> to vector<3x8x4xf32>
    %c0_37 = arith.constant 0 : index
    %c0_38 = arith.constant 0 : index
    %c24 = arith.constant 24 : index
    %20 = vector.load %arg8[%c0_37, %c0_38, %c24] : memref<4x8x36xf32, #tpu.memory_space<vmem>>, vector<3x8x4xf32>
    tpu.vector_store %arg8[%c0_37, %c0_38, %c24], %19 {strides = array<i32>} : memref<4x8x36xf32, #tpu.memory_space<vmem>>, vector<3x8x4xf32>,
    %c0_39 = arith.constant 0 : index
    %c0_40 = arith.constant 0 : index
    %c0_41 = arith.constant 0 : index
    %c0_42 = arith.constant 0 : index
    %21 = vector.load %arg3[%c0_39, %c0_40, %c0_41, %c0_42] : memref<4x1x9x4xf32, #tpu.memory_space<vmem>>, vector<1x1x8x4xf32>
    %22 = vector.shape_cast %21 : vector<1x1x8x4xf32> to vector<1x8x4xf32>
    %c3_43 = arith.constant 3 : index
    %c0_44 = arith.constant 0 : index
    %c24_45 = arith.constant 24 : index
    %23 = vector.load %arg8[%c3_43, %c0_44, %c24_45] : memref<4x8x36xf32, #tpu.memory_space<vmem>>, vector<1x8x4xf32>
    tpu.vector_store %arg8[%c3_43, %c0_44, %c24_45], %22 {strides = array<i32>} : memref<4x8x36xf32, #tpu.memory_space<vmem>>, vector<1x8x4xf32>,
    %c1_46 = arith.constant 1 : index
    %c1_47 = arith.constant 1 : index
    %c0_48 = arith.constant 0 : index
    %c0_49 = arith.constant 0 : index
    %24 = vector.load %arg2[%c1_46, %c1_47, %c0_48, %c0_49] : memref<4x4x9x4xf32, #tpu.memory_space<vmem>>, vector<1x3x8x4xf32>
    %25 = vector.shape_cast %24 : vector<1x3x8x4xf32> to vector<3x8x4xf32>
    %c0_50 = arith.constant 0 : index
    %c0_51 = arith.constant 0 : index
    %c28 = arith.constant 28 : index
    %26 = vector.load %arg8[%c0_50, %c0_51, %c28] : memref<4x8x36xf32, #tpu.memory_space<vmem>>, vector<3x8x4xf32>
    tpu.vector_store %arg8[%c0_50, %c0_51, %c28], %25 {strides = array<i32>} : memref<4x8x36xf32, #tpu.memory_space<vmem>>, vector<3x8x4xf32>,
    %c1_52 = arith.constant 1 : index
    %c0_53 = arith.constant 0 : index
    %c0_54 = arith.constant 0 : index
    %c0_55 = arith.constant 0 : index
    %27 = vector.load %arg3[%c1_52, %c0_53, %c0_54, %c0_55] : memref<4x1x9x4xf32, #tpu.memory_space<vmem>>, vector<1x1x8x4xf32>
    %28 = vector.shape_cast %27 : vector<1x1x8x4xf32> to vector<1x8x4xf32>
    %c3_56 = arith.constant 3 : index
    %c0_57 = arith.constant 0 : index
    %c28_58 = arith.constant 28 : index
    %29 = vector.load %arg8[%c3_56, %c0_57, %c28_58] : memref<4x8x36xf32, #tpu.memory_space<vmem>>, vector<1x8x4xf32>
    tpu.vector_store %arg8[%c3_56, %c0_57, %c28_58], %28 {strides = array<i32>} : memref<4x8x36xf32, #tpu.memory_space<vmem>>, vector<1x8x4xf32>,
    %c0_59 = arith.constant 0 : index
    %c1_60 = arith.constant 1 : index
    %c1_61 = arith.constant 1 : index
    %c0_62 = arith.constant 0 : index
    %30 = vector.load %arg2[%c0_59, %c1_60, %c1_61, %c0_62] : memref<4x4x9x4xf32, #tpu.memory_space<vmem>>, vector<1x3x8x4xf32>
    %31 = vector.shape_cast %30 : vector<1x3x8x4xf32> to vector<3x8x4xf32>
    %c0_63 = arith.constant 0 : index
    %c0_64 = arith.constant 0 : index
    %c32 = arith.constant 32 : index
    %32 = vector.load %arg8[%c0_63, %c0_64, %c32] : memref<4x8x36xf32, #tpu.memory_space<vmem>>, vector<3x8x4xf32>
    tpu.vector_store %arg8[%c0_63, %c0_64, %c32], %31 {strides = array<i32>} : memref<4x8x36xf32, #tpu.memory_space<vmem>>, vector<3x8x4xf32>,
    %c0_65 = arith.constant 0 : index
    %c0_66 = arith.constant 0 : index
    %c1_67 = arith.constant 1 : index
    %c0_68 = arith.constant 0 : index
    %33 = vector.load %arg3[%c0_65, %c0_66, %c1_67, %c0_68] : memref<4x1x9x4xf32, #tpu.memory_space<vmem>>, vector<1x1x8x4xf32>
    %34 = vector.shape_cast %33 : vector<1x1x8x4xf32> to vector<1x8x4xf32>
    %c3_69 = arith.constant 3 : index
    %c0_70 = arith.constant 0 : index
    %c32_71 = arith.constant 32 : index
    %35 = vector.load %arg8[%c3_69, %c0_70, %c32_71] : memref<4x8x36xf32, #tpu.memory_space<vmem>>, vector<1x8x4xf32>
    tpu.vector_store %arg8[%c3_69, %c0_70, %c32_71], %34 {strides = array<i32>} : memref<4x8x36xf32, #tpu.memory_space<vmem>>, vector<1x8x4xf32>,
    %c0_72 = arith.constant 0 : index
    %c0_73 = arith.constant 0 : index
    %c0_74 = arith.constant 0 : index
    %36 = vector.load %arg8[%c0_72, %c0_73, %c0_74] : memref<4x8x36xf32, #tpu.memory_space<vmem>>, vector<4x8x36xf32>
    %37 = vector.shape_cast %36 : vector<4x8x36xf32> to vector<32x36xf32>
    %c0_75 = arith.constant 0 : index
    %c0_76 = arith.constant 0 : index
    %38 = vector.load %arg4[%c0_75, %c0_76] : memref<36x128xf32, #tpu.memory_space<vmem>>, vector<36x128xf32>
    %cst = arith.constant dense<0.000000e+00> : vector<32x128xf32>
    %39 = tpu.matmul %37, %38, %cst {dimension_numbers = #tpu.dot_dimension_numbers<[1], [0], [0], [1], [0, 0, 1, 1], [], []>} : vector<32x36xf32>, vector<36x128xf32>, vector<32x128xf32> -> vector<32x128xf32>
    %cst_77 = arith.constant dense<0.000000e+00> : vector<32xf32>
    %40 = vector.multi_reduction <add>, %39, %cst_77 [1] : vector<32x128xf32> to vector<32xf32>
    %41 = vector.shape_cast %40 : vector<32xf32> to vector<32x1xf32>
    %42 = arith.mulf %39, %39 : vector<32x128xf32>
    %cst_78 = arith.constant dense<0.000000e+00> : vector<32xf32>
    %43 = vector.multi_reduction <add>, %42, %cst_78 [1] : vector<32x128xf32> to vector<32xf32>
    %44 = vector.shape_cast %43 : vector<32xf32> to vector<32x1xf32>
    %cst_79 = arith.constant 1.250000e-01 : f32
    %45 = vector.broadcast %cst_79 : f32 to vector<32x1xf32>
    %46 = arith.mulf %41, %45 : vector<32x1xf32>
    %cst_80 = arith.constant 1.250000e-01 : f32
    %47 = vector.broadcast %cst_80 : f32 to vector<32x1xf32>
    %48 = arith.mulf %44, %47 : vector<32x1xf32>
    %49 = arith.mulf %46, %46 : vector<32x1xf32>
    %50 = arith.subf %48, %49 : vector<32x1xf32>
    %cst_81 = arith.constant 0.000000e+00 : f32
    %51 = vector.broadcast %cst_81 : f32 to vector<32x1xf32>
    %52 = arith.maximumf %50, %51 : vector<32x1xf32>
    %53 = vector.broadcast %46 : vector<32x1xf32> to vector<32x128xf32>
    %54 = arith.subf %39, %53 : vector<32x128xf32>
    %cst_82 = arith.constant 9.99999997E-7 : f32
    %55 = vector.broadcast %cst_82 : f32 to vector<32x1xf32>
    %56 = arith.addf %52, %55 : vector<32x1xf32>
    %57 = math.rsqrt %56 : vector<32x1xf32>
    %58 = vector.broadcast %57 : vector<32x1xf32> to vector<32x128xf32>
    %59 = arith.mulf %54, %58 : vector<32x128xf32>
    %c0_83 = arith.constant 0 : index
    %c0_84 = arith.constant 0 : index
    %60 = vector.load %arg5[%c0_83, %c0_84] : memref<1x128xf32, #tpu.memory_space<vmem>>, vector<1x128xf32>
    %61 = vector.broadcast %60 : vector<1x128xf32> to vector<32x128xf32>
    %62 = arith.mulf %59, %61 : vector<32x128xf32>
    %c0_85 = arith.constant 0 : index
    %c0_86 = arith.constant 0 : index
    %63 = vector.load %arg6[%c0_85, %c0_86] : memref<1x128xf32, #tpu.memory_space<vmem>>, vector<1x128xf32>
    %64 = vector.broadcast %63 : vector<1x128xf32> to vector<32x128xf32>
    %65 = arith.addf %62, %64 : vector<32x128xf32>
    %c0_87 = arith.constant 0 : index
    %c0_88 = arith.constant 0 : index
    %c0_89 = arith.constant 0 : index
    %66 = vector.load %arg7[%c0_87, %c0_88, %c0_89] : memref<1x32x128xf32, #tpu.memory_space<vmem>>, vector<1x32x128xf32>
    %67 = vector.shape_cast %66 : vector<1x32x128xf32> to vector<32x128xf32>
    %68 = vector.shape_cast %65 : vector<32x128xf32> to vector<1x32x128xf32>
    tpu.vector_store %arg7[%c0_87, %c0_88, %c0_89], %68 {strides = array<i32>} : memref<1x32x128xf32, #tpu.memory_space<vmem>>, vector<1x32x128xf32>,
    return
  }
  func.func @transform_0(%arg0: i32, %arg1: i32) -> (i32, i32, i32, i32) {
    %c0_i32 = arith.constant 0 : i32
    %c0_i32_0 = arith.constant 0 : i32
    %c0_i32_1 = arith.constant 0 : i32
    return %arg0, %arg1, %c0_i32, %c0_i32_0 : i32, i32, i32, i32
  }
  func.func @transform_1(%arg0: i32, %arg1: i32) -> (i32, i32, i32, i32) {
    %c1_i32 = arith.constant 1 : i32
    %0 = arith.addi %arg1, %c1_i32 : i32
    %c4_i32 = arith.constant 4 : i32
    %1 = arith.muli %0, %c4_i32 : i32
    %c0_i32 = arith.constant 0 : i32
    %c0_i32_0 = arith.constant 0 : i32
    %c0_i32_1 = arith.constant 0 : i32
    return %arg0, %1, %c0_i32, %c0_i32_0 : i32, i32, i32, i32
  }
  func.func @transform_2(%arg0: i32, %arg1: i32) -> (i32, i32) {
    %c0_i32 = arith.constant 0 : i32
    %c0_i32_0 = arith.constant 0 : i32
    %c0_i32_1 = arith.constant 0 : i32
    return %c0_i32, %c0_i32_0 : i32, i32
  }
  func.func @transform_3(%arg0: i32, %arg1: i32) -> (i32, i32) {
    %c0_i32 = arith.constant 0 : i32
    %c0_i32_0 = arith.constant 0 : i32
    %c0_i32_1 = arith.constant 0 : i32
    return %c0_i32, %c0_i32_0 : i32, i32
  }
  func.func @transform_4(%arg0: i32, %arg1: i32) -> (i32, i32) {
    %c0_i32 = arith.constant 0 : i32
    %c0_i32_0 = arith.constant 0 : i32
    %c0_i32_1 = arith.constant 0 : i32
    return %c0_i32, %c0_i32_0 : i32, i32
  }
  func.func @transform_5(%arg0: i32, %arg1: i32) -> (i32, i32, i32) {
    %c0_i32 = arith.constant 0 : i32
    %c0_i32_0 = arith.constant 0 : i32
    return %arg0, %arg1, %c0_i32 : i32, i32, i32
  }
}

</mosaic_0001>

<bundles_post_ra>
// kernel: downsample_forward.1
= control target key start
LH: loop header
LB: loop body
LE: loop exit
PB: predicated region body
PF: predicated region fallthrough
CT: control target
= control target key end

     0   :  { %s2081_s0 = inlined_call_operand.vmem [shape: f32[8,9,9,4], index: 0, kind: input, shape index: {}, may-alias: {0,1}]   ;;  %s2082_s1 = inlined_call_operand.vmem [shape: f32[8,9,9,4], index: 1, kind: input, shape index: {}, may-alias: {0,1}]   ;;  %s2083_s2 = inlined_call_operand.vmem [shape: f32[36,128], index: 2, kind: input, shape index: {}]   ;;  %s2084_s3 = inlined_call_operand.vmem [shape: f32[1,128], index: 3, kind: input, shape index: {}]   ;;  %s2085_s4 = inlined_call_operand.vmem [shape: f32[1,128], index: 4, kind: input, shape index: {}]   ;;  %s2086_s5 = inlined_call_operand.hbm [shape: f32[2,64,128], index: 5, kind: output, shape index: {}]  }
   0x1   :  { %2092 = sst [smem:[#allocation14_spill]] %s2081_s0 }
   0x2   :  { %2093 = sst [smem:[#allocation15_spill]] %s2086_s5 }
   0x3   :  { %10 = vsyncpa [#allocation6], 0 }
   0x4   :  { %12 = vsyncpa [#allocation6 + $0x1], 0  ;;  %s1629_s18 = smov 0   ;;  %s1631_s19 = smov 0  }
   0x5   :  { %s1633_s20 = smov 0   ;;  %s1635_s21 = smov 0  }
   0x6   :  { %s1637_s22 = smov 0   ;;  %s1639_s23 = smov 0  }
   0x7   :  { %s1641_s24 = smov 0   ;;  %s1643_s25 = smov 0  }
   0x8   :  { %s1645_s26 = smov 0   ;;  %s1647_s27 = smov 0  }
   0x9 LB: > { %2094 = sst [smem:[#allocation8_spill]] %s1552_s22  ;;  %s1153_s28 = sadd.s32 4294967295, %s1572_s27   ;;  %s1572_s27 = sphi %s1647_s27, %s18_s27   ;;  %s1568_s26 = sphi %s1645_s26, %s2126_s26   ;;  %s1564_s25 = sphi %s1643_s25, %s2125_s25   ;;  %s1560_s24 = sphi %s1641_s24, %s2124_s24   ;;  %s1556_s23 = sphi %s1639_s23, %s2123_s23   ;;  %s1552_s22 = sphi %s1637_s22, %s2122_s22   ;;  %s1548_s21 = sphi %s1635_s21, %s2121_s21   ;;  %s1544_s20 = sphi %s1633_s20, %s2120_s20   ;;  %s1540_s19 = sphi %s1631_s19, %s2119_s19   ;;  %s1536_s18 = sphi %s1629_s18, %s2118_s18  }
   0xa   : > { %s27_s30 = sadd.s32 1, %s1564_s25  ;;  %s30_s6 = sadd.s32 1, %s1568_s26 }
   0xb   : > { %p28_p0 = scmp.ge.s32.totalorder %s27_s30, 2  ;;  %s39_s7 = sadd.s32 1, %s1552_s22 }
   0xc   : > { %p46_p1 = scmp.ne.s32.totalorder %s1552_s22, %s1548_s21  ;;  %p47_p2 = scmp.eq.s32.totalorder %s1572_s27, 0 }
   0xd   : > { %s2128_s30 = smov (%p28_p0, %s27_s30), 0  ;;  %s2130_s6 = smov (!%p28_p0, %s30_s6), %s1568_s26 }
   0xe   : > { %2095 = sst [smem:[#allocation9_spill]] %s2128_s30  ;;  %s35_s8 = ssub.s32 %s1564_s25, %s2128_s30 }
   0xf   : > { %p1697_p3 = por %p47_p2, %p46_p1  ;;  %p32_p4 = scmp.ge.s32.totalorder %s2130_s6, 2 }
  0x10   : > { %s1231_s10 = sshll.u32 %s1564_s25, 2  ;;  %s1233_s12 = sshll.u32 %s2128_s30, 2 }
  0x11   : > { %s1232_s11 = sadd.s32 4, %s1231_s10  ;;  %s2132_s6 = smov (%p32_p4, %s2130_s6), 0 }
  0x12   : > { %2097 = sst [smem:[#allocation10_spill]] %s2132_s6  ;;  %s1234_s13 = sadd.s32 4, %s1233_s12 }
  0x13   : > { %s71_s14 = sadd.s32 1, %s1544_s20  ;;  %s34_s15 = ssub.s32 %s1568_s26, %s2132_s6 }
  0x14   : > { %s67_s16 = ssub.s32 %s1232_s11, %s1234_s13  ;;  %s36_s17 = sor.u32 %s35_s8, %s34_s15 }
  0x15   : > { %s68_s29 = sor.u32 %s67_s16, %s34_s15  ;;  %p37_p5 = scmp.eq.s32.totalorder %s36_s17, 0 }
  0x16   : > { %p69_p6 = scmp.eq.s32.totalorder %s68_s29, 0  ;;  %p78_p7 = scmp.ne.s32.totalorder %s1544_s20, %s1540_s19 }
  0x17   : > { %p173_p8 = scmp.eq.s32.totalorder %s1153_s28, 3  ;;  %p178_p11 = scmp.ne.s32.totalorder %s1548_s21, %s1536_s18 }
  0x18   : > { %s1711_s10 = scalar_select %p37_p5, %s1552_s22, %s39_s7  }
  0x19   : > { %s1714_s5 = scalar_select %p69_p6, %s1544_s20, %s71_s14  }
  0x1a   : > { %2098 = sst [smem:[#allocation11_spill]] %s1711_s10  ;;  %p1718_p9 = por %p78_p7, %p47_p2 }
  0x1b   : > { %2099 = sst [smem:[#allocation12_spill]] %s1714_s5  ;;  %p1725_p10 = por %p173_p8, %p46_p1 }
  0x1c   : > { %s2102_s8 = sadd.s32 4294967294, %s1572_s27   ;;  %p1158_p0 = scmp.ge.s32.totalorder %s1572_s27, 4 }
  0x1d   : > { %p179_p12 = scmp.eq.s32.totalorder %s2102_s8, 3 }
  0x1f   : > { %p1733_p13 = por %p179_p12, %p178_p11  ;;  %204 = sbr.rel (%p1158_p0) target bundleno = 95 (0x5f), region = 28 }
  0x21   : > { %s2103_s29 = scalar_select %p1733_p13, 1, 0 }
  0x23   : > { %2104 = sst [smem:[#allocation13_spill]] %s2103_s29 }
  0x24   : > { %207 = sbr.rel (!%p1697_p3) target bundleno = 79 (0x4f), region = 32  ;;  %s209_s28 = sand.u32 (%p1697_p3), 1, %s1552_s22  }
  0x25   : > { %s1741_s7 = sshll.u32 (%p1697_p3), %s209_s28, 8  ;;  %s1236_s11 = sshll.u32 (%p1697_p3), %s1564_s25, 3 }
  0x26   : > { %s1254_s13 = smul.u32 (%p1697_p3), 72, %s1568_s26  ;;  %s2105_s0 = sld [smem:[#allocation14_spill]] (%p1697_p3) }
  0x27   : > { %s211_s6 = scalar_lea.vmem (%p1697_p3), [#allocation3], %s1741_s7   ;;  %s1758_s28 = smov (%p1697_p3), 0  }
  0x28   : > { %s222_s14 = sadd.s32 (%p1697_p3), %s1254_s13, %s1236_s11  ;;  %s2106_s9 = smov (%p1697_p3), %s211_s6 }
  0x29   : > { %s1167_s15 = sshll.u32 %s222_s14, 3  ;;  %s1760_s22 = smov 0  }
  0x2c   : > { %s1748_s8 = scalar_lea.vmem %s2105_s0, %s1167_s15  }
  0x2d   : > { %s2107_s10 = smov %s1748_s8 }
  0x2e LB: >> { %v359_v0 = vld [vmem:[%s1580_s10] sm:$0xff]  ;;  %v361_v1 = vld [vmem:[%s1580_s10 + $0x8] sm:$0xff]  ;;  %v363_v2 = vld [vmem:[%s1580_s10 + $0x10] sm:$0xff]  ;;  %s423_s11 = sadd.s32 1, %s1584_s28  ;;  %s353_s22 = sadd.s32 1, %s1588_s22   ;;  %s1588_s22 = sphi %s1760_s22, %s353_s22   ;;  %s1584_s28 = sphi %s1758_s28, %s2110_s28   ;;  %s1580_s10 = sphi %s2107_s10, %s2109_s10   ;;  %s1576_s9 = sphi %s2106_s9, %s2108_s9  }
  0x2f   : >> { %360 = vst [vmem:[%s1576_s9] sm:$0xff] %v359_v0  ;;  %v365_v3 = vld [vmem:[%s1580_s10 + $0x18] sm:$0xff]  ;;  %p424_p1 = scmp.ge.s32.totalorder %s423_s11, 1  ;;  %v367_v4 = vld [vmem:[%s1580_s10 + $0x20] sm:$0xff]  ;;  %v369_v5 = vld [vmem:[%s1580_s10 + $0x28] sm:$0xff]  ;;  %p352_p2 = scmp.ge.s32.totalorder %s353_s22, 1 }
  0x30   : >> { %362 = vst [vmem:[%s1576_s9 + $0x8] sm:$0xff] %v361_v1  ;;  %v371_v6 = vld [vmem:[%s1580_s10 + $0x30] sm:$0xff]  ;;  %v373_v7 = vld [vmem:[%s1580_s10 + $0x38] sm:$0xff]  ;;  %v379_v10 = vld [vmem:[%s1580_s10 + $0xa0] sm:$0xff] }
  0x31   : >> { %364 = vst [vmem:[%s1576_s9 + $0x10] sm:$0xff] %v363_v2  ;;  %s2134_s11 = smov (%p424_p1, %s423_s11), 0  ;;  %v375_v8 = vld [vmem:[%s1580_s10 + $0x90] sm:$0xff]  ;;  %v377_v9 = vld [vmem:[%s1580_s10 + $0x98] sm:$0xff]  ;;  %v381_v11 = vld [vmem:[%s1580_s10 + $0xa8] sm:$0xff] }
  0x32   : >> { %366 = vst [vmem:[%s1576_s9 + $0x18] sm:$0xff] %v365_v3  ;;  %s1171_s13 = sshll.u32 %s2134_s11, 6  ;;  %v383_v12 = vld [vmem:[%s1580_s10 + $0xb0] sm:$0xff]  ;;  %v385_v13 = vld [vmem:[%s1580_s10 + $0xb8] sm:$0xff]  ;;  %v387_v14 = vld [vmem:[%s1580_s10 + $0xc0] sm:$0xff]  ;;  %s2110_s28 = smov %s2134_s11 }
  0x33   : >> { %368 = vst [vmem:[%s1576_s9 + $0x20] sm:$0xff] %v367_v4  ;;  %s1791_s14 = scalar_lea.vmem %s1748_s8, %s1171_s13   ;;  %s1795_s15 = scalar_lea.vmem %s211_s6, %s1171_s13 [#allocation3]   ;;  %v389_v15 = vld [vmem:[%s1580_s10 + $0xc8] sm:$0xff]  ;;  %v391_v16 = vld [vmem:[%s1580_s10 + $0x120] sm:$0xff]  ;;  %v395_v18 = vld [vmem:[%s1580_s10 + $0x130] sm:$0xff] }
  0x34   : >> { %370 = vst [vmem:[%s1576_s9 + $0x28] sm:$0xff] %v369_v5  ;;  %v393_v17 = vld [vmem:[%s1580_s10 + $0x128] sm:$0xff]  ;;  %v397_v19 = vld [vmem:[%s1580_s10 + $0x138] sm:$0xff]  ;;  %v399_v20 = vld [vmem:[%s1580_s10 + $0x140] sm:$0xff] }
  0x35   : >> { %372 = vst [vmem:[%s1576_s9 + $0x30] sm:$0xff] %v371_v6  ;;  %v401_v21 = vld [vmem:[%s1580_s10 + $0x148] sm:$0xff]  ;;  %v403_v22 = vld [vmem:[%s1580_s10 + $0x150] sm:$0xff]  ;;  %v405_v23 = vld [vmem:[%s1580_s10 + $0x158] sm:$0xff] }
  0x36   : >> { %374 = vst [vmem:[%s1576_s9 + $0x38] sm:$0xff] %v373_v7  ;;  %v407_v24 = vld [vmem:[%s1580_s10 + $0x1b0] sm:$0xff]  ;;  %v409_v25 = vld [vmem:[%s1580_s10 + $0x1b8] sm:$0xff]  ;;  %v411_v26 = vld [vmem:[%s1580_s10 + $0x1c0] sm:$0xff] }
  0x37   : >> { %376 = vst [vmem:[%s1576_s9 + $0x40] sm:$0xff] %v375_v8  ;;  %v413_v27 = vld [vmem:[%s1580_s10 + $0x1c8] sm:$0xff]  ;;  %v415_v28 = vld [vmem:[%s1580_s10 + $0x1d0] sm:$0xff]  ;;  %v417_v29 = vld [vmem:[%s1580_s10 + $0x1d8] sm:$0xff] }
  0x38   : >> { %378 = vst [vmem:[%s1576_s9 + $0x48] sm:$0xff] %v377_v9  ;;  %v419_v30 = vld [vmem:[%s1580_s10 + $0x1e0] sm:$0xff]  ;;  %v421_v31 = vld [vmem:[%s1580_s10 + $0x1e8] sm:$0xff]  ;;  %s2109_s10 = smov %s1791_s14 }
  0x39   : >> { %380 = vst [vmem:[%s1576_s9 + $0x50] sm:$0xff] %v379_v10 }
  0x3a   : >> { %382 = vst [vmem:[%s1576_s9 + $0x58] sm:$0xff] %v381_v11 }
  0x3b   : >> { %384 = vst [vmem:[%s1576_s9 + $0x60] sm:$0xff] %v383_v12 }
  0x3c   : >> { %386 = vst [vmem:[%s1576_s9 + $0x68] sm:$0xff] %v385_v13 }
  0x3d   : >> { %388 = vst [vmem:[%s1576_s9 + $0x70] sm:$0xff] %v387_v14 }
  0x3e   : >> { %390 = vst [vmem:[%s1576_s9 + $0x78] sm:$0xff] %v389_v15 }
  0x3f   : >> { %392 = vst [vmem:[%s1576_s9 + $0x80] sm:$0xff] %v391_v16 }
  0x40   : >> { %394 = vst [vmem:[%s1576_s9 + $0x88] sm:$0xff] %v393_v17 }
  0x41   : >> { %396 = vst [vmem:[%s1576_s9 + $0x90] sm:$0xff] %v395_v18 }
  0x42   : >> { %398 = vst [vmem:[%s1576_s9 + $0x98] sm:$0xff] %v397_v19 }
  0x43   : >> { %400 = vst [vmem:[%s1576_s9 + $0xa0] sm:$0xff] %v399_v20 }
  0x44   : >> { %402 = vst [vmem:[%s1576_s9 + $0xa8] sm:$0xff] %v401_v21 }
  0x45   : >> { %404 = vst [vmem:[%s1576_s9 + $0xb0] sm:$0xff] %v403_v22 }
  0x46   : >> { %406 = vst [vmem:[%s1576_s9 + $0xb8] sm:$0xff] %v405_v23 }
  0x47   : >> { %408 = vst [vmem:[%s1576_s9 + $0xc0] sm:$0xff] %v407_v24 }
  0x48   : >> { %410 = vst [vmem:[%s1576_s9 + $0xc8] sm:$0xff] %v409_v25 }
  0x49   : >> { %412 = vst [vmem:[%s1576_s9 + $0xd0] sm:$0xff] %v411_v26 }
  0x4a   : >> { %414 = vst [vmem:[%s1576_s9 + $0xd8] sm:$0xff] %v413_v27  ;;  %355 = sbr.rel (!%p352_p2) target bundleno = 46 (0x2e), region = 193 }
  0x4b   : >> { %416 = vst [vmem:[%s1576_s9 + $0xe0] sm:$0xff] %v415_v28 }
  0x4c   : >> { %418 = vst [vmem:[%s1576_s9 + $0xe8] sm:$0xff] %v417_v29 }
  0x4d   : >> { %420 = vst [vmem:[%s1576_s9 + $0xf0] sm:$0xff] %v419_v30 }
  0x4e   : >> { %422 = vst [vmem:[%s1576_s9 + $0xf8] sm:$0xff] %v421_v31  ;;  %s2108_s9 = smov %s1795_s15 }
  0x4f PF: > { %466 = sbr.rel (!%p1718_p9) target bundleno = 95 (0x5f), region = 84  ;;  %s468_s16 = sand.u32 (%p1718_p9), 1, %s1544_s20  }
  0x50   : > { %s1180_s17 = sshll.u32 (%p1718_p9), %s1564_s25, 3  ;;  %s1179_s13 = sshll.u32 (%p1718_p9), %s468_s16, 6 }
  0x51   : > { %s1056_s0 = smul.u32 (%p1718_p9), 72, %s1568_s26  ;;  %s470_s22 = scalar_lea.vmem (%p1718_p9), [#allocation4], %s1179_s13 }
  0x53   : > { %s1057_s5 = sadd.s32 (%p1718_p9), %s1180_s17, %s1056_s0 }
  0x54   : > { %s1181_s15 = sshll.u32 %s1057_s5, 3 }
  0x55   : > { %s1059_s11 = scalar_lea.vmem %s2082_s1, %s1181_s15 }
  0x56   : > { %v1182_v32 = vld [vmem:[%s1059_s11 + $0x40] sm:$0xff]  ;;  %v1183_v33 = vld [vmem:[%s1059_s11 + $0x48] sm:$0xff]  ;;  %v1184_v34 = vld [vmem:[%s1059_s11 + $0xd0] sm:$0xff] }
  0x57   : > { %522 = vst [vmem:[%s470_s22] sm:$0xff] %v1182_v32  ;;  %v1185_v35 = vld [vmem:[%s1059_s11 + $0xd8] sm:$0xff]  ;;  %v1186_v36 = vld [vmem:[%s1059_s11 + $0x160] sm:$0xff]  ;;  %v1187_v37 = vld [vmem:[%s1059_s11 + $0x168] sm:$0xff] }
  0x58   : > { %524 = vst [vmem:[%s470_s22 + $0x8] sm:$0xff] %v1183_v33  ;;  %v1188_v38 = vld [vmem:[%s1059_s11 + $0x1f0] sm:$0xff]  ;;  %v1189_v39 = vld [vmem:[%s1059_s11 + $0x1f8] sm:$0xff] }
  0x59   : > { %526 = vst [vmem:[%s470_s22 + $0x10] sm:$0xff] %v1184_v34 }
  0x5a   : > { %528 = vst [vmem:[%s470_s22 + $0x18] sm:$0xff] %v1185_v35 }
  0x5b   : > { %530 = vst [vmem:[%s470_s22 + $0x20] sm:$0xff] %v1186_v36 }
  0x5c   : > { %532 = vst [vmem:[%s470_s22 + $0x28] sm:$0xff] %v1187_v37 }
  0x5d   : > { %534 = vst [vmem:[%s470_s22 + $0x30] sm:$0xff] %v1188_v38 }
  0x5e   : > { %536 = vst [vmem:[%s470_s22 + $0x38] sm:$0xff] %v1189_v39 }
  0x5f PF: > { %p1190_p3 = scmp.ge.s32.totalorder %s1572_s27, 1  ;;  %p541_p4 = scmp.lt.s32.totalorder %s1572_s27, 5 }
  0x61   : > { %p542_p5 = pnand %p1190_p3, %p541_p4 }
  0x62   : > { %s1869_s0 = sand.u32 (!%p542_p5), 1, %s1548_s21   ;;  %s1590_s6 = smov (!%p542_p5), 8  }
  0x63   : > { %545 = sbr.rel (%p542_p5) target bundleno = 611 (0x263), region = 122  ;;  %s1191_s5 = sshll.u32 (!%p542_p5), %s1869_s0, 8 }
  0x64   : > { %s1872_s30 = scalar_lea.vmem (!%p542_p5), [#allocation3], %s1191_s5  ;;  %s1591_s10 = smov (!%p542_p5), 4  }
  0x65   : > { %s1592_s29 = smov (!%p542_p5), 12   ;;  %s1593_s7 = smov (!%p542_p5), 16  }
  0x66   : > { %s555_s8 = sand.u32 (!%p542_p5), 1, %s1540_s19   ;;  %s1594_s9 = smov (!%p542_p5), 20  }
  0x67   : > { %s1192_s28 = sshll.u32 (!%p542_p5), %s555_s8, 6  ;;  %s1595_s16 = smov (!%p542_p5), 24  }
  0x68   : > { %v1875_v40 = vld [vmem:[%s1872_s30 + $0x21] sm:$0xff]  ;;  %v635_v43 = vld [vmem:[%s1872_s30 + $0x31] sm:$0xff]  ;;  %s557_s17 = scalar_lea.vmem [#allocation4], %s1192_s28  ;;  %s1596_s19 = smov 28   ;;  %vm601_vm0 = vcmask 31744   ;;  %vm627_vm1 = vcmask 64544  }
  0x69   : > { %v1878_v41 = vld [vmem:[%s1872_s30 + $0x60] sm:$0xff]  ;;  %644 = vrot.lane.b32.xlu1 %v1875_v40, %s1590_s6  ;;  %v1197_v44 = vld [vmem:[%s1872_s30 + $0x70] sm:$0xff]  ;;  %s1597_s13 = smov 32   ;;  %vm652_vm2 = vcmask 97344   ;;  %vm678_vm3 = vcmask 130144   ;;  %vm835_vm4 = vcmask 1043456  }
  0x6a   : > { %619 = vrot.lane.b32.xlu0 %v1878_v41, %s1591_s10  ;;  %v1200_v42 = vld [vmem:[%s1872_s30 + $0xa0] sm:$0xff]  ;;  %v1201_v45 = vld [vmem:[%s1872_s30 + $0xb0] sm:$0xff]  ;;  %vm704_vm5 = vcmask 162944   ;;  %vm729_vm6 = vcmask 195744   ;;  %v820_v14 = vld [vmem:[%s2083_s2 + $0x18] sm:$0xff]  ;;  %vm750_vm7 = vcmask 228544  }
  0x6b   : > { %670 = vrot.lane.b32.xlu2 %v1200_v42, %s1592_s29  ;;  %v1205_v46 = vld [vmem:[%s1872_s30 + $0xf0] sm:$0xff]  ;;  %v1204_v47 = vld [vmem:[%s1872_s30 + $0xe0] sm:$0xff]  ;;  %v818_v16 = vld [vmem:[%s2083_s2 + $0x8] sm:$0xff]  ;;  %vm777_vm8 = vcmask 261344   ;;  %vm803_vm9 = vcmask 294144   ;;  %vm822_vm10 = vcmask 293888  }
  0x6c   : > { %v1208_v48 = vld [vmem:[%s1872_s30 + $0xa1] sm:$0xff]  ;;  %v1212_v49 = vld [vmem:[%s1872_s30 + $0x30] sm:$0xff]  ;;  %s1226_s15 = sshll.u32 %s1556_s23, 2  ;;  %s1227_s14 = sshll.u32 %s1560_s24, 3 }
  0x6d   : > { %v1209_v50 = vld [vmem:[%s1872_s30 + $0xb1] sm:$0xff]  ;;  %v754_v51 = vld [vmem:[%s557_s17] sm:$0xff]  ;;  %605 = vst.msk [vmem:[#allocation2 + $0x18] sm:$0xff] %vm601_vm0, %v1212_v49  ;;  %s992_s11 = sadd.s32 %s1227_s14, %s1226_s15 }
  0x6e   : > { %v1195_v52 = vld [vmem:[%s1872_s30 + $0x50] sm:$0xff]  ;;  %v1194_v53 = vld [vmem:[%s1872_s30 + $0x40] sm:$0xff]  ;;  %s1228_s22 = sshll.u32 %s992_s11, 3 }
  0x6f   : > { %v632_v54 = vld [vmem:[%s1872_s30 + $0x1] sm:$0xff]  ;;  %v1216_v55 = vld [vmem:[%s557_s17 + $0x10] sm:$0xff] }
  0x70   : > { %v633_v56 = vld [vmem:[%s1872_s30 + $0x11] sm:$0xff]  ;;  %v807_v57 = vld [vmem:[%s557_s17 + $0x1] sm:$0xff] }
  0x71   : > { %646 = vrot.lane.b32.xlu1 %v635_v43, %s1590_s6  ;;  %v1198_v58 = vld [vmem:[%s1872_s30 + $0x80] sm:$0xff]  ;;  %v1199_v60 = vld [vmem:[%s1872_s30 + $0x90] sm:$0xff] }
  0x72   : > { %621 = vrot.lane.b32.xlu0 %v1197_v44, %s1591_s10  ;;  %v1202_v59 = vld [vmem:[%s1872_s30 + $0xc0] sm:$0xff]  ;;  %v1203_v61 = vld [vmem:[%s1872_s30 + $0xd0] sm:$0xff] }
  0x73   : > { %672 = vrot.lane.b32.xlu2 %v1201_v45, %s1592_s29  ;;  %v1207_v62 = vld [vmem:[%s1872_s30 + $0x91] sm:$0xff]  ;;  %v1206_v63 = vld [vmem:[%s1872_s30 + $0x81] sm:$0xff] }
  0x74   : > { %v1210_v0 = vld [vmem:[%s1872_s30 + $0x10] sm:$0xff]  ;;  %v1211_v1 = vld [vmem:[%s1872_s30 + $0x20] sm:$0xff] }
  0x75   : > { %604 = vst.msk [vmem:[#allocation2 + $0x10] sm:$0xff] %vm601_vm0, %v1211_v1  ;;  %v597_v7 = vld [vmem:[%s1872_s30] sm:$0xff]  ;;  %v819_v15 = vld [vmem:[%s2083_s2 + $0x10] sm:$0xff] }
  0x76   : > { %603 = vst.msk [vmem:[#allocation2 + $0x8] sm:$0xff] %vm601_vm0, %v1210_v0  ;;  %v821_v10 = vld [vmem:[%s2083_s2 + $0x20] sm:$0xf] }
  0x77   : > { %602 = vst.msk [vmem:[#allocation2] sm:$0xff] %vm601_vm0, %v597_v7  ;;  %1240 = vmatpush.msk.msra.mxu2 %vm835_vm4, %v821_v10  ;;  %1241 = vmatpush.msk.msra.mxu3 %vm835_vm4, %v821_v10  ;;  %v817_v18 = vld [vmem:[%s2083_s2] sm:$0xff] }
  0x78   : > { %1220 = vmatpush.msk.msra.mxu0 %vm835_vm4, %v821_v10  ;;  %1239 = vmatpush.msk.msra.mxu1 %vm835_vm4, %v821_v10 }
  0x79   : > { %698 = vrot.lane.b32.xlu1 %v1205_v46, %s1593_s7  ;;  %1243 = vmatpush.msra.mxu2 %v820_v14 }
  0x7a   : > { %696 = vrot.lane.b32.xlu0 %v1204_v47, %s1593_s7  ;;  %1244 = vmatpush.msra.mxu3 %v820_v14 }
  0x7b   : > { %721 = vrot.lane.b32.xlu2 %v1208_v48, %s1594_s9  ;;  %851 = vmatpush.msra.mxu0 %v820_v14 }
  0x7c   : > { %1242 = vmatpush.msra.mxu1 %v820_v14  ;;  %1246 = vmatpush.msra.mxu2 %v819_v15 }
  0x7d   : > { %1247 = vmatpush.msra.mxu3 %v819_v15  ;;  %852 = vmatpush.msra.mxu0 %v819_v15 }
  0x7e   : > { %1245 = vmatpush.msra.mxu1 %v819_v15  ;;  %1249 = vmatpush.msra.mxu2 %v818_v16 }
  0x7f   : > { %1250 = vmatpush.msra.mxu3 %v818_v16  ;;  %853 = vmatpush.msra.mxu0 %v818_v16 }
  0x80   : > { %1248 = vmatpush.msra.mxu1 %v818_v16  ;;  %1252 = vmatpush.msra.mxu2 %v817_v18 }
  0x81   : > { %745 = vrot.lane.b32.xlu1 %v1212_v49, %s1595_s16  ;;  %1253 = vmatpush.msra.mxu3 %v817_v18 }
  0x82   : > { %723 = vrot.lane.b32.xlu0 %v1209_v50, %s1594_s9  ;;  %854 = vmatpush.msra.mxu0 %v817_v18 }
  0x83   : > { %756 = vrot.lane.b32.xlu2 %v754_v51, %s1595_s16  ;;  %1251 = vmatpush.msra.mxu1 %v817_v18 }
  0x89   : > { %617 = vrot.lane.b32.xlu1 %v1195_v52, %s1591_s10 }
  0x8a   : > { %615 = vrot.lane.b32.xlu0 %v1194_v53, %s1591_s10  ;;  %s2111_s10 = sld [smem:[#allocation15_spill]] }
  0x8b   : > { %772 = vrot.lane.b32.xlu2 %v1197_v44, %s1596_s19 }
  0x90   : > { %s994_s23 = scalar_lea.hbm %s2111_s10, %s1228_s22  ;;  %s1445_s17 = scalar_lea.hbm %s2111_s10, 128 }
  0x91   : > { %640 = vrot.lane.b32.xlu1 %v632_v54, %s1590_s6 }
  0x92   : > { %784 = vrot.lane.b32.xlu0 %v1216_v55, %s1596_s19 }
  0x93   : > { %642 = vrot.lane.b32.xlu2 %v633_v56, %s1590_s6 }
  0x99   : > { %809 = vrot.lane.b32.xlu1 %v807_v57, %s1597_s13 }
  0x9a   : > { %798 = vrot.lane.b32.xlu0 %v635_v43, %s1597_s13 }
  0x9b   : > { %666 = vrot.lane.b32.xlu2 %v1198_v58, %s1592_s29 }
  0xa1   : > { %692 = vrot.lane.b32.xlu1 %v1202_v59, %s1593_s7 }
  0xa2   : > { %668 = vrot.lane.b32.xlu0 %v1199_v60, %s1592_s29  ;;  %s997_s29 = sshll.u32 %s994_s23, 4  ;;  %s998_s29 = int_to_ptr.hbm [resolvable:$true] %s997_s29 }
  0xa3   : > { %694 = vrot.lane.b32.xlu2 %v1203_v61, %s1593_s7  ;;  %s981_s7 = scalar_lea.sflag [#allocation6], %s1869_s0  ;;  %s1439_s8 = sshra.s32 %s998_s29, 4  ;;  %s1440_s8 = int_to_ptr.hbm [resolvable:$true] %s1439_s8 }
  0xa4   : > { %p1446_p9 = scmp.lt.s32.totalorder %s1440_s8, %s2111_s10 }
  0xa9   : > { %719 = vrot.lane.b32.xlu1 %v1207_v62, %s1594_s9 }
  0xaa   : > { %717 = vrot.lane.b32.xlu0 %v1206_v63, %s1594_s9  ;;  %s1441_s9 = scalar_lea.hbm %s1440_s8, 32 }
  0xab   : > { %741 = vrot.lane.b32.xlu2 %v1210_v0, %s1595_s16  ;;  %p1442_p6 = scmp.ne.s32.totalorder %s1440_s8, %s1441_s9  ;;  %p1447_p11 = scmp.lt.s32.totalorder %s1445_s17, %s1441_s9 }
  0xad   : > { %p1443_p7 = pnand %p1442_p6, %p1725_p10  ;;  %p1448_p12 = por %p1447_p11, %p1446_p9 }
  0xaf   : > { %p1444_p8 = pneg %p1443_p7 }
  0xb1   : > { %768 = vrot.lane.b32.xlu1 %v1195_v52, %s1596_s19  ;;  %p1449_p0 = pnand %p1448_p12, %p1444_p8 }
  0xb2   : > { %743 = vrot.lane.b32.xlu0 %v1211_v1, %s1595_s16  ;;  %s1193_s16 = sshll.u32 %s1869_s0, 5 }
  0xb3   : > { %770 = vrot.lane.b32.xlu2 %v1878_v41, %s1596_s19 }
  0xb9   : > { %796 = vrot.lane.b32.xlu1 %v1875_v40, %s1597_s13 }
  0xba   : > { %794 = vrot.lane.b32.xlu0 %v633_v56, %s1597_s13  ;;  %s2014_s13 = scalar_lea.vmem [#allocation5], %s1193_s16 }
  0xbb   : > { %s995_s24 = sshll.u32 %s2014_s13, 4  ;;  %s996_s24 = int_to_ptr.vmem [resolvable:$true] %s995_s24 }
  0xc5   : > { %v671_v2 = vpop.permute.xlu2 %670 }
  0xcd   : > { %v673_v3 = vpop.permute.xlu2 %672 }
  0xd5   : > { %v722_v6 = vpop.permute.xlu2 %721 }
  0xdb   : > { %v645_v4 = vpop.permute.xlu1 %644 }
  0xdc   : > { %v620_v5 = vpop.permute.xlu0 %619 }
  0xdd   : > { %630 = vst.msk [vmem:[#allocation2 + $0x10] sm:$0xff] %vm627_vm1, %v620_v5  ;;  %v757_v11 = vpop.permute.xlu2 %756 }
  0xde   : > { %655 = vst.msk [vmem:[#allocation2 + $0x10] sm:$0xff] %vm652_vm2, %v645_v4 }
  0xdf   : > { %681 = vst.msk [vmem:[#allocation2 + $0x10] sm:$0xff] %vm678_vm3, %v671_v2 }
  0xe3   : > { %v647_v8 = vpop.permute.xlu1 %646 }
  0xe4   : > { %v622_v9 = vpop.permute.xlu0 %621 }
  0xe5   : > { %631 = vst.msk [vmem:[#allocation2 + $0x18] sm:$0xff] %vm627_vm1, %v622_v9  ;;  %v773_v17 = vpop.permute.xlu2 %772 }
  0xe6   : > { %656 = vst.msk [vmem:[#allocation2 + $0x18] sm:$0xff] %vm652_vm2, %v647_v8  ;;  %v2004_v8 = vld [vmem:[%s2084_s3] ss:$0 sm:$0xff] }
  0xe7   : > { %682 = vst.msk [vmem:[#allocation2 + $0x18] sm:$0xff] %vm678_vm3, %v673_v3 }
  0xeb   : > { %v699_v12 = vpop.permute.xlu1 %698 }
  0xec   : > { %v697_v13 = vpop.permute.xlu0 %696  ;;  %708 = vst.msk [vmem:[#allocation2 + $0x18] sm:$0xff] %vm704_vm5, %v699_v12 }
  0xed   : > { %707 = vst.msk [vmem:[#allocation2 + $0x10] sm:$0xff] %vm704_vm5, %v697_v13  ;;  %v643_v21 = vpop.permute.xlu2 %642  ;;  %v2010_v13 = vld [vmem:[%s2085_s4] ss:$0 sm:$0xff] }
  0xee   : > { %732 = vst.msk [vmem:[#allocation2 + $0x10] sm:$0xff] %vm729_vm6, %v722_v6 }
  0xf3   : > { %v746_v19 = vpop.permute.xlu1 %745 }
  0xf4   : > { %v724_v20 = vpop.permute.xlu0 %723  ;;  %753 = vst.msk [vmem:[#allocation2 + $0x10] sm:$0xff] %vm750_vm7, %v746_v19 }
  0xf5   : > { %733 = vst.msk [vmem:[#allocation2 + $0x18] sm:$0xff] %vm729_vm6, %v724_v20  ;;  %v667_v26 = vpop.permute.xlu2 %666 }
  0xf6   : > { %760 = vst.msk [vmem:[#allocation2 + $0x18] sm:$0xff] %vm750_vm7, %v757_v11 }
  0xf7   : > { %780 = vst.msk [vmem:[#allocation2 + $0x10] sm:$0xff] %vm777_vm8, %v773_v17 }
  0xfb   : > { %v618_v22 = vpop.permute.xlu1 %617 }
  0xfc   : > { %v616_v23 = vpop.permute.xlu0 %615  ;;  %629 = vst.msk [vmem:[#allocation2 + $0x8] sm:$0xff] %vm627_vm1, %v618_v22 }
  0xfd   : > { %628 = vst.msk [vmem:[#allocation2] sm:$0xff] %vm627_vm1, %v616_v23  ;;  %v695_v29 = vpop.permute.xlu2 %694 }
  0xfe   : > { %654 = vst.msk [vmem:[#allocation2 + $0x8] sm:$0xff] %vm652_vm2, %v643_v21 }
 0x103   : > { %v641_v24 = vpop.permute.xlu1 %640 }
 0x104   : > { %v785_v25 = vpop.permute.xlu0 %784  ;;  %653 = vst.msk [vmem:[#allocation2] sm:$0xff] %vm652_vm2, %v641_v24 }
 0x105   : > { %787 = vst.msk [vmem:[#allocation2 + $0x18] sm:$0xff] %vm777_vm8, %v785_v25  ;;  %v742_v34 = vpop.permute.xlu2 %741 }
 0x106   : > { %679 = vst.msk [vmem:[#allocation2] sm:$0xff] %vm678_vm3, %v667_v26 }
 0x10b   : > { %v810_v27 = vpop.permute.xlu1 %809 }
 0x10c   : > { %v799_v28 = vpop.permute.xlu0 %798  ;;  %812 = vst.msk [vmem:[#allocation2 + $0x18] sm:$0xff] %vm803_vm9, %v810_v27 }
 0x10d   : > { %806 = vst.msk [vmem:[#allocation2 + $0x10] sm:$0xff] %vm803_vm9, %v799_v28  ;;  %v771_v37 = vpop.permute.xlu2 %770 }
 0x113   : > { %v693_v30 = vpop.permute.xlu1 %692  ;;  %v816_v32 = vld [vmem:[#allocation2 + $0x18] sm:$0xff] }
 0x114   : > { %v669_v31 = vpop.permute.xlu0 %668  ;;  %705 = vst.msk [vmem:[#allocation2] sm:$0xff] %vm704_vm5, %v693_v30  ;;  %v815_v33 = vld [vmem:[#allocation2 + $0x10] sm:$0xff]  ;;  %1224 = vmatmul.msk.f32.vlgmr.msra.gmra.mxu3 %vm822_vm10, %v816_v32 }
 0x115   : > { %680 = vst.msk [vmem:[#allocation2 + $0x8] sm:$0xff] %vm678_vm3, %v669_v31  ;;  %1223 = vmatmul.msk.f32.vlgmr.msra.gmra.mxu2 %vm822_vm10, %v815_v33 }
 0x116   : > { %706 = vst.msk [vmem:[#allocation2 + $0x8] sm:$0xff] %vm704_vm5, %v695_v29 }
 0x11b   : > { %v720_v35 = vpop.permute.xlu1 %719 }
 0x11c   : > { %v718_v36 = vpop.permute.xlu0 %717  ;;  %731 = vst.msk [vmem:[#allocation2 + $0x8] sm:$0xff] %vm729_vm6, %v720_v35 }
 0x11d   : > { %730 = vst.msk [vmem:[#allocation2] sm:$0xff] %vm729_vm6, %v718_v36 }
 0x11e   : > { %751 = vst.msk [vmem:[#allocation2] sm:$0xff] %vm750_vm7, %v742_v34 }
 0x123   : > { %v769_v38 = vpop.permute.xlu1 %768 }
 0x124   : > { %v744_v39 = vpop.permute.xlu0 %743  ;;  %778 = vst.msk [vmem:[#allocation2] sm:$0xff] %vm777_vm8, %v769_v38 }
 0x125   : > { %752 = vst.msk [vmem:[#allocation2 + $0x8] sm:$0xff] %vm750_vm7, %v744_v39 }
 0x126   : > { %779 = vst.msk [vmem:[#allocation2 + $0x8] sm:$0xff] %vm777_vm8, %v771_v37 }
 0x12b   : > { %v797_v40 = vpop.permute.xlu1 %796 }
 0x12c   : > { %v795_v41 = vpop.permute.xlu0 %794  ;;  %805 = vst.msk [vmem:[#allocation2 + $0x8] sm:$0xff] %vm803_vm9, %v797_v40 }
 0x12d   : > { %804 = vst.msk [vmem:[#allocation2] sm:$0xff] %vm803_vm9, %v795_v41 }
 0x133   : > { %v814_v42 = vld [vmem:[#allocation2 + $0x8] sm:$0xff] }
 0x134   : > { %v813_v43 = vld [vmem:[#allocation2] sm:$0xff]  ;;  %1222 = vmatmul.msk.f32.vlgmr.msra.gmra.mxu1 %vm822_vm10, %v814_v42 }
 0x135   : > { %1221 = vmatmul.msk.f32.vlgmr.msra.gmra.mxu0 %vm822_vm10, %v813_v43 }
 0x197   : > { %v1996_v50 = vpop.f32.mrf.mxu3 }
 0x198   : > { %v862_v44 = vpop.f32.mrf.mxu2  ;;  %v879_v51 = vmul.f32 %v1996_v50, %v1996_v50 }
 0x199   : > { %872 = vadd.xlane.f32.xlu1 %v862_v44  ;;  %v878_v45 = vmul.f32 %v862_v44, %v862_v44 }
 0x1a1   : > { %884 = vadd.xlane.f32.xlu1 %v878_v45 }
 0x1b1   : > { %v1986_v46 = vpop.f32.mrf.mxu1 }
 0x1b2   : > { %v1988_v47 = vpop.f32.mrf.mxu0  ;;  %870 = vadd.xlane.f32.xlu0 %v1986_v46  ;;  %v877_v48 = vmul.f32 %v1986_v46, %v1986_v46 }
 0x1b3   : > { %868 = vadd.xlane.f32.xlu2 %v1988_v47  ;;  %v876_v49 = vmul.f32 %v1988_v47, %v1988_v47 }
 0x1ba   : > { %882 = vadd.xlane.f32.xlu0 %v877_v48 }
 0x1bb   : > { %880 = vadd.xlane.f32.xlu2 %v876_v49 }
 0x1c3   : > { %874 = vadd.xlane.f32.xlu2 %v1996_v50 }
 0x1cb   : > { %886 = vadd.xlane.f32.xlu2 %v879_v51 }
 0x20c   : > { %v873_v52 = vpop.xlane.xlu1 %872 }
 0x20d   : > { %v890_v53 = vmul.f32 0.125, %v873_v52 }
 0x20f   : > { %v898_v55 = vmul.f32 %v890_v53, %v890_v53  ;;  %v910_v7 = vsub.f32 %v862_v44, %v890_v53 }
 0x214   : > { %v885_v54 = vpop.xlane.xlu1 %884 }
 0x215   : > { %v894_v56 = vmul.f32 0.125, %v885_v54 }
 0x217   : > { %v902_v57 = vsub.f32 %v894_v56, %v898_v55 }
 0x219   : > { %v906_v58 = vmax.f32 %v902_v57, 0.0 }
 0x21b   : > { %v914_v59 = vadd.f32 1e-06, %v906_v58 }
 0x21d   : > { %1417 = vrsqrt.f32 %v914_v59  ;;  %vm942_vm12 = vweird.f32 %v914_v59 }
 0x223   : > { %v1418_v60 = vpop.eup %1417 }
 0x224   : > { %v937_v61 = vmul.f32 %v1418_v60, %v914_v59  ;;  %vm943_vm11 = vweird.f32 %v1418_v60 }
 0x225   : > { %v871_v62 = vpop.xlane.xlu0 %870  ;;  %vm944_vm13 = vmor %vm942_vm12, %vm943_vm11 }
 0x226   : > { %v938_v63 = vmul.f32 %v1418_v60, %v937_v61  ;;  %v869_v0 = vpop.xlane.xlu2 %868  ;;  %v889_v3 = vmul.f32 0.125, %v871_v62 }
 0x227   : > { %v888_v4 = vmul.f32 0.125, %v869_v0 }
 0x228   : > { %v939_v1 = vmul.f32 0.5, %v938_v63  ;;  %v897_v6 = vmul.f32 %v889_v3, %v889_v3  ;;  %v909_v44 = vsub.f32 %v1986_v46, %v889_v3 }
 0x229   : > { %v896_v15 = vmul.f32 %v888_v4, %v888_v4  ;;  %v908_v48 = vsub.f32 %v1988_v47, %v888_v4 }
 0x22a   : > { %v940_v2 = vsub.f32 1.5, %v939_v1 }
 0x22c   : > { %v941_v5 = vmul.f32 %v1418_v60, %v940_v2 }
 0x22d   : > { %v883_v9 = vpop.xlane.xlu0 %882 }
 0x22e   : > { %v945_v10 = vsel %vm944_vm13, %v1418_v60, %v941_v5  ;;  %v893_v11 = vmul.f32 0.125, %v883_v9  ;;  %v881_v12 = vpop.xlane.xlu2 %880 }
 0x22f   : > { %v958_v14 = vmul.f32 %v945_v10, %v910_v7  ;;  %v892_v16 = vmul.f32 0.125, %v881_v12 }
 0x230   : > { %v901_v17 = vsub.f32 %v893_v11, %v897_v6 }
 0x231   : > { %v966_v18 = vmul.f32 %v2004_v8, %v958_v14  ;;  %v900_v19 = vsub.f32 %v892_v16, %v896_v15 }
 0x232   : > { %v905_v20 = vmax.f32 %v901_v17, 0.0 }
 0x233   : > { %v974_v21 = vadd.f32 %v2010_v13, %v966_v18  ;;  %v904_v22 = vmax.f32 %v900_v19, 0.0 }
 0x234   : > { %v913_v23 = vadd.f32 1e-06, %v905_v20 }
 0x235   : > { %978 = vst [vmem:[%s2014_s13 + $0x10] sm:$0xff] %v974_v21  ;;  %v912_v24 = vadd.f32 1e-06, %v904_v22 }
 0x236   : > { %1419 = vrsqrt.f32 %v913_v23  ;;  %v875_v25 = vpop.xlane.xlu2 %874  ;;  %vm932_vm14 = vweird.f32 %v913_v23 }
 0x237   : > { %1421 = vrsqrt.f32 %v912_v24  ;;  %v891_v26 = vmul.f32 0.125, %v875_v25  ;;  %vm922_vm2 = vweird.f32 %v912_v24 }
 0x239   : > { %v899_v33 = vmul.f32 %v891_v26, %v891_v26  ;;  %v911_v62 = vsub.f32 %v1996_v50, %v891_v26 }
 0x23c   : > { %v1420_v27 = vpop.eup %1419 }
 0x23d   : > { %v1422_v28 = vpop.eup %1421  ;;  %v927_v29 = vmul.f32 %v1420_v27, %v913_v23  ;;  %vm933_vm15 = vweird.f32 %v1420_v27 }
 0x23e   : > { %v917_v30 = vmul.f32 %v1422_v28, %v912_v24  ;;  %v887_v31 = vpop.xlane.xlu2 %886  ;;  %vm923_vm0 = vweird.f32 %v1422_v28  ;;  %vm934_vm1 = vmor %vm932_vm14, %vm933_vm15 }
 0x23f   : > { %v928_v32 = vmul.f32 %v1420_v27, %v927_v29  ;;  %v895_v34 = vmul.f32 0.125, %v887_v31  ;;  %vm924_vm3 = vmor %vm922_vm2, %vm923_vm0 }
 0x240   : > { %v918_v35 = vmul.f32 %v1422_v28, %v917_v30 }
 0x241   : > { %v929_v36 = vmul.f32 0.5, %v928_v32  ;;  %v903_v37 = vsub.f32 %v895_v34, %v899_v33 }
 0x242   : > { %v919_v38 = vmul.f32 0.5, %v918_v35 }
 0x243   : > { %v930_v39 = vsub.f32 1.5, %v929_v36  ;;  %v907_v40 = vmax.f32 %v903_v37, 0.0 }
 0x244   : > { %v920_v41 = vsub.f32 1.5, %v919_v38 }
 0x245   : > { %v931_v42 = vmul.f32 %v1420_v27, %v930_v39  ;;  %v915_v43 = vadd.f32 1e-06, %v907_v40 }
 0x246   : > { %v921_v45 = vmul.f32 %v1422_v28, %v920_v41 }
 0x247   : > { %v935_v49 = vsel %vm934_vm1, %v1420_v27, %v931_v42  ;;  %1423 = vrsqrt.f32 %v915_v43  ;;  %vm952_vm5 = vweird.f32 %v915_v43 }
 0x248   : > { %v957_v51 = vmul.f32 %v935_v49, %v909_v44  ;;  %v925_v52 = vsel %vm924_vm3, %v1422_v28, %v921_v45 }
 0x249   : > { %v956_v53 = vmul.f32 %v925_v52, %v908_v48 }
 0x24a   : > { %v965_v54 = vmul.f32 %v2004_v8, %v957_v51 }
 0x24b   : > { %v964_v55 = vmul.f32 %v2004_v8, %v956_v53 }
 0x24c   : > { %v973_v46 = vadd.f32 %v2010_v13, %v965_v54 }
 0x24d   : > { %v1424_v56 = vpop.eup %1423  ;;  %v972_v57 = vadd.f32 %v2010_v13, %v964_v55 }
 0x24e   : > { %977 = vst [vmem:[%s2014_s13 + $0x8] sm:$0xff] %v973_v46  ;;  %v947_v58 = vmul.f32 %v1424_v56, %v915_v43  ;;  %vm953_vm4 = vweird.f32 %v1424_v56 }
 0x24f   : > { %976 = vst [vmem:[%s2014_s13] sm:$0xff] %v972_v57  ;;  %vm954_vm6 = vmor %vm952_vm5, %vm953_vm4 }
 0x250   : > { %v948_v47 = vmul.f32 %v1424_v56, %v947_v58 }
 0x252   : > { %v949_v59 = vmul.f32 0.5, %v948_v47 }
 0x254   : > { %v950_v60 = vsub.f32 1.5, %v949_v59 }
 0x256   : > { %v951_v61 = vmul.f32 %v1424_v56, %v950_v60 }
 0x258   : > { %v955_v63 = vsel %vm954_vm6, %v1424_v56, %v951_v61 }
 0x259   : > { %v959_v0 = vmul.f32 %v955_v63, %v911_v62 }
 0x25b   : > { %v967_v1 = vmul.f32 %v2004_v8, %v959_v0 }
 0x25d   : > { %v975_v2 = vadd.f32 %v2010_v13, %v967_v1 }
 0x25f   : > { %979 = vst [vmem:[%s2014_s13 + $0x18] sm:$0xff] %v975_v2 }
 0x260   : > { %1452 = shalt.err (!%p1449_p0)
}
 0x261   : > { %s1598_s0 = smov 128  }
 0x262   : > { %1255 = dma.vmem_to_hbm [thread:$0]  (%p1725_p10), %s996_s24, 512, %s998_s29, %s981_s7, %s1598_s0, %s1598_s0, %s1590_s6  }
 0x263 PF: > { %p1261_p1 = scmp.ge.s32.totalorder %s1572_s27, 2  ;;  %s1012_s14 = sand.u32 1, %s1536_s18  }
 0x264   : > { %s1013_s11 = scalar_lea.sflag [#allocation6], %s1012_s14 }
 0x265   : > { %p1258_p2 = pnand %p1261_p1, %p1733_p13 }
 0x267   : > { %p1259_p3 = pneg %p1258_p2 }
 0x269   : > { %1527 = dma.done.wait (%p1259_p3), %s1013_s11, 512  }
 0x26a   : > { %1529 = vsyncadd (%p1259_p3), %s1013_s11, 4294966784  ;;  %s18_s27 = sadd.s32 1, %s1572_s27   ;;  %s2113_s12 = sld [smem:[#allocation12_spill]] }
 0x26b   : > { %p15_p4 = scmp.ge.s32.totalorder %s18_s27, 6   ;;  %s2114_s22 = sld [smem:[#allocation8_spill]] }
 0x26c   : > { %s2115_s6 = sld [smem:[#allocation11_spill]]  ;;  %s2118_s18 = smov %s1548_s21 }
 0x26d   : > { %s2116_s5 = sld [smem:[#allocation9_spill]]  ;;  %s2119_s19 = smov %s1544_s20 }
 0x26e   : > { %s2117_s30 = sld [smem:[#allocation10_spill]]  ;;  %s2123_s23 = smov %s1564_s25 }
 0x26f   : > { %s2124_s24 = smov %s1568_s26 }
 0x270   : > { %s2120_s20 = smov %s2113_s12  ;;  %17 = sbr.rel (!%p15_p4) target bundleno = 9 (0x9), region = 215 }
 0x271   : > { %s2121_s21 = smov %s2114_s22 }
 0x272   : > { %s2122_s22 = smov %s2115_s6 }
 0x273   : > { %s2125_s25 = smov %s2116_s5 }
 0x274   : > { %s2126_s26 = smov %s2117_s30 }
 0x275   :  { %1019 = vsyncpa [#allocation6], 1 }
 0x276   :  { %1021 = vsyncpa [#allocation6 + $0x1], 1 }

</bundles_post_ra>
